<compile_context>
chip_gen: v5e
topology: v5e:2x2
jax: 0.10.0
libtpu: 0.0.40
codegen_flags: <defaults>
</compile_context>

<pallas_src>
import functools
import math

import jax
import jax.numpy as jnp
from jax import lax
from jax.experimental import pallas as pl
from jax.experimental.pallas import tpu as pltpu


def _layer_norm(x, w, b, eps=1e-5):
    # f32 statistics, biased variance, eps=1e-5 -> nn.LayerNorm defaults.
    mean = jnp.mean(x, axis=-1, keepdims=True)
    var = jnp.mean(jnp.square(x - mean), axis=-1, keepdims=True)
    return (x - mean) * lax.rsqrt(var + eps) * w + b


def encoder_layer_kernel(x_ref, kb_ref,
                         wqkv_ref, bqkv_ref, wo_ref, bo_ref,
                         ln1w_ref, ln1b_ref,
                         w1_ref, b1_ref, w2_ref, b2_ref,
                         ln2w_ref, ln2b_ref,
                         out_ref, act_ref, *, num_heads):
    """One grid step = one (batch element, layer) pair.

    Grid = (N, L); L is the trailing 'arbitrary' axis, so for a fixed batch
    element the layers run back-to-back with the activation carried in
    `act_ref` (VMEM scratch).  Weights are streamed per layer via BlockSpec.
    """
    f32, bf16 = jnp.float32, jnp.bfloat16
    l = pl.program_id(1)

    # Load the input activation for this batch element at the first layer.
    @pl.when(l == 0)
    def _():
        act_ref[...] = x_ref[0]

    x = act_ref[...]                           # (S, E) f32
    S, E = x.shape
    H = num_heads
    Dh = E // H
    scale = 1.0 / math.sqrt(Dh)

    wqkv = wqkv_ref[0]                         # (3H, E, Dh) bf16
    bqkv = bqkv_ref[0]                         # (3H, 1, Dh) f32
    wo = wo_ref[0]                             # (H, Dh, E)  bf16
    bo = bo_ref[0]                             # (1, E)      f32
    kb = kb_ref[0]                             # (1, S) f32: 0 allowed / -1e30 pad

    # ---- self attention (post-norm nn.TransformerEncoderLayer) ----
    xb = x.astype(bf16)
    xg = jnp.broadcast_to(xb, (3 * H, S, E))   # (3H, S, E) bf16
    # Single batched projection -> head-major Q/K/V slabs, no transposes.
    qkv = jnp.einsum('gse,ged->gsd', xg, wqkv,
                     preferred_element_type=f32) + bqkv        # (3H, S, Dh) f32
    qkv = qkv.astype(bf16)                     # cast once
    q = qkv[:H]                                # (H, S, Dh)
    k = qkv[H:2 * H]                           # (H, S, Dh)
    v = qkv[2 * H:]                            # (H, S, Dh)

    s = jnp.einsum('hqd,hkd->hqk', q, k,
                   preferred_element_type=f32) * scale + kb    # (H, S, S)
    s = s - jnp.max(s, axis=-1, keepdims=True)
    p = jnp.exp(s)
    p = p * pl.reciprocal(jnp.sum(p, axis=-1, keepdims=True), approx=True)

    ctx = jnp.einsum('hqk,hkd->hqd', p.astype(bf16), v,
                     preferred_element_type=f32)               # (H, S, Dh)
    # concat(heads) @ Wo^T  ==  sum_h ctx_h @ Wo_h  (no lane concatenate).
    attn = jnp.einsum('hsd,hde->hse', ctx.astype(bf16), wo,
                      preferred_element_type=f32)              # (H, S, E)
    attn = jnp.sum(attn, axis=0) + bo                          # (S, E)

    # residual + LayerNorm1
    x1 = _layer_norm(x + attn, ln1w_ref[0], ln1b_ref[0])

    # ---- feed forward: linear1 -> relu -> linear2 ----
    hdn = jnp.dot(x1.astype(bf16), w1_ref[0],
                  preferred_element_type=f32) + b1_ref[0]      # (S, F)
    hdn = jnp.maximum(hdn, 0.0)
    ff = jnp.dot(hdn.astype(bf16), w2_ref[0],
                 preferred_element_type=f32) + b2_ref[0]       # (S, E)

    # residual + LayerNorm2
    y = _layer_norm(x1 + ff, ln2w_ref[0], ln2b_ref[0])

    # Carry activation to the next layer; emit output at the last layer.
    act_ref[...] = y

    @pl.when(l == pl.num_programs(1) - 1)
    def _():
        out_ref[0] = y


def transformer_encoder(src, src_key_padding_mask, stacked_params, num_heads):
    """nn.TransformerEncoder(nn.TransformerEncoderLayer(...), L) forward in eval
    mode (dropout = identity), relu activation, post-norm, no final norm."""
    S, N, E = src.shape
    F = stacked_params[6].shape[-1]            # w1 is (L, E, F)
    L = stacked_params[0].shape[0]
    H = num_heads

    # (S, N, E) -> batch-first (N, S, E) (tiny host-side transpose).
    x = jnp.transpose(src, (1, 0, 2)).astype(jnp.float32)

    # Per-batch additive key bias (N, 1, S): 0 where allowed, -1e30 for padded
    # keys.  O(N*S), built outside; broadcast over heads/queries in-kernel.
    key_bias = jnp.where(src_key_padding_mask[:, None, :],
                         jnp.float32(-1e30), jnp.float32(0.0))

    kernel = functools.partial(encoder_layer_kernel, num_heads=num_heads)

    def _param_spec(p):
        nd = p.ndim
        return pl.BlockSpec((1,) + tuple(p.shape[1:]),
                            lambda n, l, _nd=nd: (l,) + (0,) * (_nd - 1))

    in_specs = (
        [pl.BlockSpec((1, S, E), lambda n, l: (n, 0, 0)),     # x (batch block)
         pl.BlockSpec((1, 1, S), lambda n, l: (n, 0, 0))]     # key bias row
        + [_param_spec(p) for p in stacked_params]            # layer-streamed
    )
    out_specs = pl.BlockSpec((1, S, E), lambda n, l: (n, 0, 0))

    # Advisory cost estimate (helps XLA schedule around the custom call).
    attn_proj_flops = 8 * S * E * E            # in_proj (3E) + out_proj
    score_ctx_flops = 4 * S * S * E
    ffn_flops = 4 * S * E * F
    flops = N * L * (attn_proj_flops + score_ctx_flops + ffn_flops)
    transcendentals = N * L * H * S * S
    param_bytes = sum(int(p.size) * p.dtype.itemsize for p in stacked_params)
    bytes_accessed = int(N * param_bytes + 2 * N * S * E * 4 + N * S * 4)

    out = pl.pallas_call(
        kernel,
        out_shape=jax.ShapeDtypeStruct((N, S, E), jnp.float32),
        grid_spec=pltpu.PrefetchScalarGridSpec(
            num_scalar_prefetch=0,
            grid=(N, L),
            in_specs=in_specs,
            out_specs=out_specs,
            scratch_shapes=[pltpu.VMEM((S, E), jnp.float32)],  # activation carry
        ),
        compiler_params=pltpu.CompilerParams(
            dimension_semantics=("parallel", "arbitrary"),
            vmem_limit_bytes=64 * 1024 * 1024,
        ),
        cost_estimate=pl.CostEstimate(flops=int(flops),
                                      transcendentals=int(transcendentals),
                                      bytes_accessed=bytes_accessed),
    )(x, key_bias, *stacked_params)

    return jnp.transpose(out, (1, 0, 2))       # back to (S, N, E)


def init_stacked_params(key, num_layers, d_model, num_heads, dim_feedforward):
    """Deterministic synthetic init, stored in the kernel's 'math' layout and
    stacked with a leading num_layers axis.  Mapping from PyTorch weights:
      wqkv[g]       = in_proj_weight[g*Dh:(g+1)*Dh, :].T   (g over [q|k|v] x heads) -> (L, 3H, E, Dh)
      bqkv[g]       = in_proj_bias[g*Dh:(g+1)*Dh]                                   -> (L, 3H, 1, Dh)
      wo[h]         = out_proj.weight[:, h*Dh:(h+1)*Dh].T                           -> (L, H, Dh, E)
      w1 / w2       = linear1.weight.T / linear2.weight.T                           -> (L, E, F) / (L, F, E)
    MXU operands are bf16; biases / LayerNorm params stay f32."""
    E, F, H = d_model, dim_feedforward, num_heads
    Dh = E // H
    keys = jax.random.split(key, num_layers)

    def one_layer(k):
        ks = jax.random.split(k, 7)
        wqkv = jax.random.normal(ks[0], (3 * H, E, Dh), jnp.float32) / jnp.sqrt(jnp.float32(E))
        bqkv = 0.02 * jax.random.normal(ks[1], (3 * H, 1, Dh), jnp.float32)
        wo = jax.random.normal(ks[2], (H, Dh, E), jnp.float32) / jnp.sqrt(jnp.float32(E))
        bo = 0.02 * jax.random.normal(ks[3], (1, E), jnp.float32)
        ln1w = jnp.ones((1, E), jnp.float32)
        ln1b = jnp.zeros((1, E), jnp.float32)
        w1 = jax.random.normal(ks[4], (E, F), jnp.float32) / jnp.sqrt(jnp.float32(E))
        b1 = 0.02 * jax.random.normal(ks[5], (1, F), jnp.float32)
        w2 = jax.random.normal(ks[6], (F, E), jnp.float32) / jnp.sqrt(jnp.float32(F))
        b2 = jnp.zeros((1, E), jnp.float32)
        ln2w = jnp.ones((1, E), jnp.float32)
        ln2b = jnp.zeros((1, E), jnp.float32)
        return (wqkv, bqkv, wo, bo, ln1w, ln1b, w1, b1, w2, b2, ln2w, ln2b)

    per_layer = [one_layer(k) for k in keys]
    stacked = [jnp.stack(ps, axis=0) for ps in zip(*per_layer)]
    bf16_weight_idx = {0, 2, 6, 8}             # wqkv, wo, w1, w2 -> MXU operands
    stacked = [p.astype(jnp.bfloat16) if i in bf16_weight_idx else p
               for i, p in enumerate(stacked)]
    return stacked


if __name__ == "__main__":
    # TransformerEncoder(input_dim=32, num_heads=4, hidden_dim=64, num_layers=2)
    S, N, E = 8, 2, 32
    num_heads, hidden_dim, num_layers = 4, 64, 2

    key = jax.random.PRNGKey(0)
    kx, kp = jax.random.split(key)
    src = jax.random.normal(kx, (S, N, E), jnp.float32)           # (seq, batch, embed)
    src_key_padding_mask = jnp.array(
        [[False] * 6 + [True] * 2,
         [False] * 5 + [True] * 3], dtype=bool)                   # (N, S), True == pad

    params = init_stacked_params(kp, num_layers, E, num_heads, hidden_dim)

    out = transformer_encoder(src, src_key_padding_mask, params, num_heads)
    out = jax.block_until_ready(out)
    assert out.shape == (S, N, E)
    assert bool(jnp.all(jnp.isfinite(out)))
    print("KERNEL_OK")
</pallas_src>

<mosaic_0001>
module attributes {stable_mosaic.version = 11 : i64} {
  func.func @encoder_layer_kernel(%arg0: i32, %arg1: i32, %arg2: memref<1x8x32xf32, #tpu.memory_space<vmem>>, %arg3: memref<1x1x8xf32, #tpu.memory_space<vmem>>, %arg4: memref<1x12x32x8xbf16, #tpu.memory_space<vmem>>, %arg5: memref<1x12x1x8xf32, #tpu.memory_space<vmem>>, %arg6: memref<1x4x8x32xbf16, #tpu.memory_space<vmem>>, %arg7: memref<1x1x32xf32, #tpu.memory_space<vmem>>, %arg8: memref<1x1x32xf32, #tpu.memory_space<vmem>>, %arg9: memref<1x1x32xf32, #tpu.memory_space<vmem>>, %arg10: memref<1x32x64xbf16, #tpu.memory_space<vmem>>, %arg11: memref<1x1x64xf32, #tpu.memory_space<vmem>>, %arg12: memref<1x64x32xbf16, #tpu.memory_space<vmem>>, %arg13: memref<1x1x32xf32, #tpu.memory_space<vmem>>, %arg14: memref<1x1x32xf32, #tpu.memory_space<vmem>>, %arg15: memref<1x1x32xf32, #tpu.memory_space<vmem>>, %arg16: memref<1x8x32xf32, #tpu.memory_space<vmem>>, %arg17: memref<8x32xf32, #tpu.memory_space<vmem>>) attributes {dimension_semantics = [#tpu.dimension_semantics<parallel>, #tpu.dimension_semantics<arbitrary>], iteration_bounds = array<i64: 2, 2>, scalar_prefetch = 0 : i64, scratch_operands = 1 : i64, tpu.core_type = #tpu.core_type<tc>, window_params = [{transform_indices = @transform_0, window_bounds = array<i64: 1, 8, 32>}, {transform_indices = @transform_1, window_bounds = array<i64: 1, 1, 8>}, {transform_indices = @transform_2, window_bounds = array<i64: 1, 12, 32, 8>}, {transform_indices = @transform_3, window_bounds = array<i64: 1, 12, 1, 8>}, {transform_indices = @transform_4, window_bounds = array<i64: 1, 4, 8, 32>}, {transform_indices = @transform_5, window_bounds = array<i64: 1, 1, 32>}, {transform_indices = @transform_6, window_bounds = array<i64: 1, 1, 32>}, {transform_indices = @transform_7, window_bounds = array<i64: 1, 1, 32>}, {transform_indices = @transform_8, window_bounds = array<i64: 1, 32, 64>}, {transform_indices = @transform_9, window_bounds = array<i64: 1, 1, 64>}, {transform_indices = @transform_10, window_bounds = array<i64: 1, 64, 32>}, {transform_indices = @transform_11, window_bounds = array<i64: 1, 1, 32>}, {transform_indices = @transform_12, window_bounds = array<i64: 1, 1, 32>}, {transform_indices = @transform_13, window_bounds = array<i64: 1, 1, 32>}, {transform_indices = @transform_14, window_bounds = array<i64: 1, 8, 32>}]} {
    %c0_i32 = arith.constant 0 : i32
    %0 = arith.cmpi eq, %arg1, %c0_i32 : i32
    %1 = arith.extui %0 : i1 to i32
    %c0_i32_0 = arith.constant 0 : i32
    %2 = arith.cmpi ne, %1, %c0_i32_0 : i32
    scf.if %2 {
      %c0_67 = arith.constant 0 : index
      %c0_68 = arith.constant 0 : index
      %c0_69 = arith.constant 0 : index
      %123 = vector.load %arg2[%c0_67, %c0_68, %c0_69] : memref<1x8x32xf32, #tpu.memory_space<vmem>>, vector<1x8x32xf32>
      %124 = vector.shape_cast %123 : vector<1x8x32xf32> to vector<8x32xf32>
      %c0_70 = arith.constant 0 : index
      %c0_71 = arith.constant 0 : index
      %125 = vector.load %arg17[%c0_70, %c0_71] : memref<8x32xf32, #tpu.memory_space<vmem>>, vector<8x32xf32>
      tpu.vector_store %arg17[%c0_70, %c0_71], %124 {strides = array<i32>} : memref<8x32xf32, #tpu.memory_space<vmem>>, vector<8x32xf32>,
    } else {
    }
    %c0 = arith.constant 0 : index
    %c0_1 = arith.constant 0 : index
    %3 = vector.load %arg17[%c0, %c0_1] : memref<8x32xf32, #tpu.memory_space<vmem>>, vector<8x32xf32>
    %c0_2 = arith.constant 0 : index
    %c0_3 = arith.constant 0 : index
    %c0_4 = arith.constant 0 : index
    %c0_5 = arith.constant 0 : index
    %4 = vector.load %arg4[%c0_2, %c0_3, %c0_4, %c0_5] : memref<1x12x32x8xbf16, #tpu.memory_space<vmem>>, vector<1x12x32x8xbf16>
    %5 = vector.shape_cast %4 : vector<1x12x32x8xbf16> to vector<12x32x8xbf16>
    %c0_6 = arith.constant 0 : index
    %c0_7 = arith.constant 0 : index
    %c0_8 = arith.constant 0 : index
    %c0_9 = arith.constant 0 : index
    %6 = vector.load %arg5[%c0_6, %c0_7, %c0_8, %c0_9] : memref<1x12x1x8xf32, #tpu.memory_space<vmem>>, vector<1x12x1x8xf32>
    %7 = vector.shape_cast %6 : vector<1x12x1x8xf32> to vector<12x1x8xf32>
    %c0_10 = arith.constant 0 : index
    %c0_11 = arith.constant 0 : index
    %c0_12 = arith.constant 0 : index
    %c0_13 = arith.constant 0 : index
    %8 = vector.load %arg6[%c0_10, %c0_11, %c0_12, %c0_13] : memref<1x4x8x32xbf16, #tpu.memory_space<vmem>>, vector<1x4x8x32xbf16>
    %9 = vector.shape_cast %8 : vector<1x4x8x32xbf16> to vector<4x8x32xbf16>
    %c0_14 = arith.constant 0 : index
    %c0_15 = arith.constant 0 : index
    %c0_16 = arith.constant 0 : index
    %10 = vector.load %arg7[%c0_14, %c0_15, %c0_16] : memref<1x1x32xf32, #tpu.memory_space<vmem>>, vector<1x1x32xf32>
    %11 = vector.shape_cast %10 : vector<1x1x32xf32> to vector<1x32xf32>
    %c0_17 = arith.constant 0 : index
    %c0_18 = arith.constant 0 : index
    %c0_19 = arith.constant 0 : index
    %12 = vector.load %arg3[%c0_17, %c0_18, %c0_19] : memref<1x1x8xf32, #tpu.memory_space<vmem>>, vector<1x1x8xf32>
    %13 = vector.shape_cast %12 : vector<1x1x8xf32> to vector<1x8xf32>
    %14 = arith.truncf %3 : vector<8x32xf32> to vector<8x32xbf16>
    %15 = vector.shape_cast %14 : vector<8x32xbf16> to vector<1x8x32xbf16>
    %16 = vector.broadcast %15 : vector<1x8x32xbf16> to vector<12x8x32xbf16>
    "tpu.trace_start"() <{level = 10 : i32, message = "gse,ged->gsd"}> : () -> ()
    %cst = arith.constant dense<0.000000e+00> : vector<12x8x8xf32>
    %17 = tpu.matmul %16, %5, %cst {dimension_numbers = #tpu.dot_dimension_numbers<[2], [1], [1], [2], [0, 0, 0, 1, 1, 2], [0], [0]>} : vector<12x8x32xbf16>, vector<12x32x8xbf16>, vector<12x8x8xf32> -> vector<12x8x8xf32>
    "tpu.trace_stop"() : () -> ()
    %18 = vector.broadcast %7 : vector<12x1x8xf32> to vector<12x8x8xf32>
    %19 = arith.addf %17, %18 : vector<12x8x8xf32>
    %20 = arith.truncf %19 : vector<12x8x8xf32> to vector<12x8x8xbf16>
    %21 = vector.extract_strided_slice %20 {offsets = [0, 0, 0], sizes = [4, 8, 8], strides = [1, 1, 1]} : vector<12x8x8xbf16> to vector<4x8x8xbf16>
    %22 = vector.extract_strided_slice %20 {offsets = [4, 0, 0], sizes = [4, 8, 8], strides = [1, 1, 1]} : vector<12x8x8xbf16> to vector<4x8x8xbf16>
    %23 = vector.extract_strided_slice %20 {offsets = [8, 0, 0], sizes = [4, 8, 8], strides = [1, 1, 1]} : vector<12x8x8xbf16> to vector<4x8x8xbf16>
    "tpu.trace_start"() <{level = 10 : i32, message = "hqd,hkd->hqk"}> : () -> ()
    %cst_20 = arith.constant dense<0.000000e+00> : vector<4x8x8xf32>
    %24 = tpu.matmul %21, %22, %cst_20 {dimension_numbers = #tpu.dot_dimension_numbers<[2], [2], [1], [1], [0, 0, 0, 1, 1, 1], [0], [0]>} : vector<4x8x8xbf16>, vector<4x8x8xbf16>, vector<4x8x8xf32> -> vector<4x8x8xf32>
    "tpu.trace_stop"() : () -> ()
    %cst_21 = arith.constant 0.353553385 : f32
    %25 = vector.broadcast %cst_21 : f32 to vector<4x8x8xf32>
    %26 = arith.mulf %24, %25 : vector<4x8x8xf32>
    %27 = vector.shape_cast %13 : vector<1x8xf32> to vector<1x1x8xf32>
    %28 = vector.broadcast %27 : vector<1x1x8xf32> to vector<4x8x8xf32>
    %29 = arith.addf %26, %28 : vector<4x8x8xf32>
    %cst_22 = arith.constant dense<0xFF800000> : vector<4x8xf32>
    %30 = vector.multi_reduction <maximumf>, %29, %cst_22 [2] : vector<4x8x8xf32> to vector<4x8xf32>
    %31 = vector.shape_cast %30 : vector<4x8xf32> to vector<4x8x1xf32>
    %32 = vector.broadcast %31 : vector<4x8x1xf32> to vector<4x8x8xf32>
    %33 = arith.subf %29, %32 : vector<4x8x8xf32>
    %34 = math.exp %33 : vector<4x8x8xf32>
    %cst_23 = arith.constant dense<0.000000e+00> : vector<4x8xf32>
    %35 = vector.multi_reduction <add>, %34, %cst_23 [2] : vector<4x8x8xf32> to vector<4x8xf32>
    %36 = vector.shape_cast %35 : vector<4x8xf32> to vector<4x8x1xf32>
    %37 = tpu.reciprocal %36 {approx = true} : vector<4x8x1xf32> -> vector<4x8x1xf32>
    %38 = vector.broadcast %37 : vector<4x8x1xf32> to vector<4x8x8xf32>
    %39 = arith.mulf %34, %38 : vector<4x8x8xf32>
    %40 = arith.truncf %39 : vector<4x8x8xf32> to vector<4x8x8xbf16>
    "tpu.trace_start"() <{level = 10 : i32, message = "hqk,hkd->hqd"}> : () -> ()
    %cst_24 = arith.constant dense<0.000000e+00> : vector<4x8x8xf32>
    %41 = tpu.matmul %40, %23, %cst_24 {dimension_numbers = #tpu.dot_dimension_numbers<[2], [1], [1], [2], [0, 0, 0, 1, 1, 2], [0], [0]>} : vector<4x8x8xbf16>, vector<4x8x8xbf16>, vector<4x8x8xf32> -> vector<4x8x8xf32>
    "tpu.trace_stop"() : () -> ()
    %42 = arith.truncf %41 : vector<4x8x8xf32> to vector<4x8x8xbf16>
    "tpu.trace_start"() <{level = 10 : i32, message = "hsd,hde->hse"}> : () -> ()
    %cst_25 = arith.constant dense<0.000000e+00> : vector<4x8x32xf32>
    %43 = tpu.matmul %42, %9, %cst_25 {dimension_numbers = #tpu.dot_dimension_numbers<[2], [1], [1], [2], [0, 0, 0, 1, 1, 2], [0], [0]>} : vector<4x8x8xbf16>, vector<4x8x32xbf16>, vector<4x8x32xf32> -> vector<4x8x32xf32>
    "tpu.trace_stop"() : () -> ()
    %cst_26 = arith.constant dense<0.000000e+00> : vector<8x32xf32>
    %44 = vector.multi_reduction <add>, %43, %cst_26 [0] : vector<4x8x32xf32> to vector<8x32xf32>
    %45 = vector.broadcast %11 : vector<1x32xf32> to vector<8x32xf32>
    %46 = arith.addf %44, %45 : vector<8x32xf32>
    %47 = arith.addf %3, %46 : vector<8x32xf32>
    %c0_27 = arith.constant 0 : index
    %c0_28 = arith.constant 0 : index
    %c0_29 = arith.constant 0 : index
    %48 = vector.load %arg8[%c0_27, %c0_28, %c0_29] : memref<1x1x32xf32, #tpu.memory_space<vmem>>, vector<1x1x32xf32>
    %49 = vector.shape_cast %48 : vector<1x1x32xf32> to vector<1x32xf32>
    %c0_30 = arith.constant 0 : index
    %c0_31 = arith.constant 0 : index
    %c0_32 = arith.constant 0 : index
    %50 = vector.load %arg9[%c0_30, %c0_31, %c0_32] : memref<1x1x32xf32, #tpu.memory_space<vmem>>, vector<1x1x32xf32>
    %51 = vector.shape_cast %50 : vector<1x1x32xf32> to vector<1x32xf32>
    %cst_33 = arith.constant dense<0.000000e+00> : vector<8xf32>
    %52 = vector.multi_reduction <add>, %47, %cst_33 [1] : vector<8x32xf32> to vector<8xf32>
    %53 = vector.shape_cast %52 : vector<8xf32> to vector<8x1xf32>
    %cst_34 = arith.constant 3.200000e+01 : f32
    %54 = vector.broadcast %cst_34 : f32 to vector<8x1xf32>
    %55 = arith.divf %53, %54 : vector<8x1xf32>
    %56 = vector.broadcast %55 : vector<8x1xf32> to vector<8x32xf32>
    %57 = arith.subf %47, %56 : vector<8x32xf32>
    %58 = arith.mulf %57, %57 : vector<8x32xf32>
    %cst_35 = arith.constant dense<0.000000e+00> : vector<8xf32>
    %59 = vector.multi_reduction <add>, %58, %cst_35 [1] : vector<8x32xf32> to vector<8xf32>
    %60 = vector.shape_cast %59 : vector<8xf32> to vector<8x1xf32>
    %cst_36 = arith.constant 3.200000e+01 : f32
    %61 = vector.broadcast %cst_36 : f32 to vector<8x1xf32>
    %62 = arith.divf %60, %61 : vector<8x1xf32>
    %63 = vector.broadcast %55 : vector<8x1xf32> to vector<8x32xf32>
    %64 = arith.subf %47, %63 : vector<8x32xf32>
    %cst_37 = arith.constant 9.99999974E-6 : f32
    %65 = vector.broadcast %cst_37 : f32 to vector<8x1xf32>
    %66 = arith.addf %62, %65 : vector<8x1xf32>
    %67 = math.rsqrt %66 : vector<8x1xf32>
    %68 = vector.broadcast %67 : vector<8x1xf32> to vector<8x32xf32>
    %69 = arith.mulf %64, %68 : vector<8x32xf32>
    %70 = vector.broadcast %49 : vector<1x32xf32> to vector<8x32xf32>
    %71 = arith.mulf %69, %70 : vector<8x32xf32>
    %72 = vector.broadcast %51 : vector<1x32xf32> to vector<8x32xf32>
    %73 = arith.addf %71, %72 : vector<8x32xf32>
    %74 = arith.truncf %73 : vector<8x32xf32> to vector<8x32xbf16>
    %c0_38 = arith.constant 0 : index
    %c0_39 = arith.constant 0 : index
    %c0_40 = arith.constant 0 : index
    %75 = vector.load %arg10[%c0_38, %c0_39, %c0_40] : memref<1x32x64xbf16, #tpu.memory_space<vmem>>, vector<1x32x64xbf16>
    %76 = vector.shape_cast %75 : vector<1x32x64xbf16> to vector<32x64xbf16>
    %cst_41 = arith.constant dense<0.000000e+00> : vector<8x64xf32>
    %77 = tpu.matmul %74, %76, %cst_41 {dimension_numbers = #tpu.dot_dimension_numbers<[1], [0], [0], [1], [0, 0, 1, 1], [], []>} : vector<8x32xbf16>, vector<32x64xbf16>, vector<8x64xf32> -> vector<8x64xf32>
    %c0_42 = arith.constant 0 : index
    %c0_43 = arith.constant 0 : index
    %c0_44 = arith.constant 0 : index
    %78 = vector.load %arg11[%c0_42, %c0_43, %c0_44] : memref<1x1x64xf32, #tpu.memory_space<vmem>>, vector<1x1x64xf32>
    %79 = vector.shape_cast %78 : vector<1x1x64xf32> to vector<1x64xf32>
    %80 = vector.broadcast %79 : vector<1x64xf32> to vector<8x64xf32>
    %81 = arith.addf %77, %80 : vector<8x64xf32>
    %cst_45 = arith.constant 0.000000e+00 : f32
    %82 = vector.broadcast %cst_45 : f32 to vector<8x64xf32>
    %83 = arith.maximumf %81, %82 : vector<8x64xf32>
    %84 = arith.truncf %83 : vector<8x64xf32> to vector<8x64xbf16>
    %c0_46 = arith.constant 0 : index
    %c0_47 = arith.constant 0 : index
    %c0_48 = arith.constant 0 : index
    %85 = vector.load %arg12[%c0_46, %c0_47, %c0_48] : memref<1x64x32xbf16, #tpu.memory_space<vmem>>, vector<1x64x32xbf16>
    %86 = vector.shape_cast %85 : vector<1x64x32xbf16> to vector<64x32xbf16>
    %cst_49 = arith.constant dense<0.000000e+00> : vector<8x32xf32>
    %87 = tpu.matmul %84, %86, %cst_49 {dimension_numbers = #tpu.dot_dimension_numbers<[1], [0], [0], [1], [0, 0, 1, 1], [], []>} : vector<8x64xbf16>, vector<64x32xbf16>, vector<8x32xf32> -> vector<8x32xf32>
    %c0_50 = arith.constant 0 : index
    %c0_51 = arith.constant 0 : index
    %c0_52 = arith.constant 0 : index
    %88 = vector.load %arg13[%c0_50, %c0_51, %c0_52] : memref<1x1x32xf32, #tpu.memory_space<vmem>>, vector<1x1x32xf32>
    %89 = vector.shape_cast %88 : vector<1x1x32xf32> to vector<1x32xf32>
    %90 = vector.broadcast %89 : vector<1x32xf32> to vector<8x32xf32>
    %91 = arith.addf %87, %90 : vector<8x32xf32>
    %92 = arith.addf %73, %91 : vector<8x32xf32>
    %c0_53 = arith.constant 0 : index
    %c0_54 = arith.constant 0 : index
    %c0_55 = arith.constant 0 : index
    %93 = vector.load %arg14[%c0_53, %c0_54, %c0_55] : memref<1x1x32xf32, #tpu.memory_space<vmem>>, vector<1x1x32xf32>
    %94 = vector.shape_cast %93 : vector<1x1x32xf32> to vector<1x32xf32>
    %c0_56 = arith.constant 0 : index
    %c0_57 = arith.constant 0 : index
    %c0_58 = arith.constant 0 : index
    %95 = vector.load %arg15[%c0_56, %c0_57, %c0_58] : memref<1x1x32xf32, #tpu.memory_space<vmem>>, vector<1x1x32xf32>
    %96 = vector.shape_cast %95 : vector<1x1x32xf32> to vector<1x32xf32>
    %cst_59 = arith.constant dense<0.000000e+00> : vector<8xf32>
    %97 = vector.multi_reduction <add>, %92, %cst_59 [1] : vector<8x32xf32> to vector<8xf32>
    %98 = vector.shape_cast %97 : vector<8xf32> to vector<8x1xf32>
    %cst_60 = arith.constant 3.200000e+01 : f32
    %99 = vector.broadcast %cst_60 : f32 to vector<8x1xf32>
    %100 = arith.divf %98, %99 : vector<8x1xf32>
    %101 = vector.broadcast %100 : vector<8x1xf32> to vector<8x32xf32>
    %102 = arith.subf %92, %101 : vector<8x32xf32>
    %103 = arith.mulf %102, %102 : vector<8x32xf32>
    %cst_61 = arith.constant dense<0.000000e+00> : vector<8xf32>
    %104 = vector.multi_reduction <add>, %103, %cst_61 [1] : vector<8x32xf32> to vector<8xf32>
    %105 = vector.shape_cast %104 : vector<8xf32> to vector<8x1xf32>
    %cst_62 = arith.constant 3.200000e+01 : f32
    %106 = vector.broadcast %cst_62 : f32 to vector<8x1xf32>
    %107 = arith.divf %105, %106 : vector<8x1xf32>
    %108 = vector.broadcast %100 : vector<8x1xf32> to vector<8x32xf32>
    %109 = arith.subf %92, %108 : vector<8x32xf32>
    %cst_63 = arith.constant 9.99999974E-6 : f32
    %110 = vector.broadcast %cst_63 : f32 to vector<8x1xf32>
    %111 = arith.addf %107, %110 : vector<8x1xf32>
    %112 = math.rsqrt %111 : vector<8x1xf32>
    %113 = vector.broadcast %112 : vector<8x1xf32> to vector<8x32xf32>
    %114 = arith.mulf %109, %113 : vector<8x32xf32>
    %115 = vector.broadcast %94 : vector<1x32xf32> to vector<8x32xf32>
    %116 = arith.mulf %114, %115 : vector<8x32xf32>
    %117 = vector.broadcast %96 : vector<1x32xf32> to vector<8x32xf32>
    %118 = arith.addf %116, %117 : vector<8x32xf32>
    %c0_64 = arith.constant 0 : index
    %c0_65 = arith.constant 0 : index
    %119 = vector.load %arg17[%c0_64, %c0_65] : memref<8x32xf32, #tpu.memory_space<vmem>>, vector<8x32xf32>
    tpu.vector_store %arg17[%c0_64, %c0_65], %118 {strides = array<i32>} : memref<8x32xf32, #tpu.memory_space<vmem>>, vector<8x32xf32>,
    %c1_i32 = arith.constant 1 : i32
    %120 = arith.cmpi eq, %arg1, %c1_i32 : i32
    %121 = arith.extui %120 : i1 to i32
    %c0_i32_66 = arith.constant 0 : i32
    %122 = arith.cmpi ne, %121, %c0_i32_66 : i32
    scf.if %122 {
      %c0_67 = arith.constant 0 : index
      %c0_68 = arith.constant 0 : index
      %c0_69 = arith.constant 0 : index
      %123 = vector.load %arg16[%c0_67, %c0_68, %c0_69] : memref<1x8x32xf32, #tpu.memory_space<vmem>>, vector<1x8x32xf32>
      %124 = vector.shape_cast %123 : vector<1x8x32xf32> to vector<8x32xf32>
      %125 = vector.shape_cast %118 : vector<8x32xf32> to vector<1x8x32xf32>
      tpu.vector_store %arg16[%c0_67, %c0_68, %c0_69], %125 {strides = array<i32>} : memref<1x8x32xf32, #tpu.memory_space<vmem>>, vector<1x8x32xf32>,
    } else {
    }
    return
  }
  func.func @transform_0(%arg0: i32, %arg1: i32) -> (i32, i32, i32) {
    %c0_i32 = arith.constant 0 : i32
    %c0_i32_0 = arith.constant 0 : i32
    %c0_i32_1 = arith.constant 0 : i32
    return %arg0, %c0_i32, %c0_i32_0 : i32, i32, i32
  }
  func.func @transform_1(%arg0: i32, %arg1: i32) -> (i32, i32, i32) {
    %c0_i32 = arith.constant 0 : i32
    %c0_i32_0 = arith.constant 0 : i32
    %c0_i32_1 = arith.constant 0 : i32
    return %arg0, %c0_i32, %c0_i32_0 : i32, i32, i32
  }
  func.func @transform_2(%arg0: i32, %arg1: i32) -> (i32, i32, i32, i32) {
    %c0_i32 = arith.constant 0 : i32
    %c0_i32_0 = arith.constant 0 : i32
    %c0_i32_1 = arith.constant 0 : i32
    %c0_i32_2 = arith.constant 0 : i32
    return %arg1, %c0_i32, %c0_i32_0, %c0_i32_1 : i32, i32, i32, i32
  }
  func.func @transform_3(%arg0: i32, %arg1: i32) -> (i32, i32, i32, i32) {
    %c0_i32 = arith.constant 0 : i32
    %c0_i32_0 = arith.constant 0 : i32
    %c0_i32_1 = arith.constant 0 : i32
    %c0_i32_2 = arith.constant 0 : i32
    return %arg1, %c0_i32, %c0_i32_0, %c0_i32_1 : i32, i32, i32, i32
  }
  func.func @transform_4(%arg0: i32, %arg1: i32) -> (i32, i32, i32, i32) {
    %c0_i32 = arith.constant 0 : i32
    %c0_i32_0 = arith.constant 0 : i32
    %c0_i32_1 = arith.constant 0 : i32
    %c0_i32_2 = arith.constant 0 : i32
    return %arg1, %c0_i32, %c0_i32_0, %c0_i32_1 : i32, i32, i32, i32
  }
  func.func @transform_5(%arg0: i32, %arg1: i32) -> (i32, i32, i32) {
    %c0_i32 = arith.constant 0 : i32
    %c0_i32_0 = arith.constant 0 : i32
    %c0_i32_1 = arith.constant 0 : i32
    return %arg1, %c0_i32, %c0_i32_0 : i32, i32, i32
  }
  func.func @transform_6(%arg0: i32, %arg1: i32) -> (i32, i32, i32) {
    %c0_i32 = arith.constant 0 : i32
    %c0_i32_0 = arith.constant 0 : i32
    %c0_i32_1 = arith.constant 0 : i32
    return %arg1, %c0_i32, %c0_i32_0 : i32, i32, i32
  }
  func.func @transform_7(%arg0: i32, %arg1: i32) -> (i32, i32, i32) {
    %c0_i32 = arith.constant 0 : i32
    %c0_i32_0 = arith.constant 0 : i32
    %c0_i32_1 = arith.constant 0 : i32
    return %arg1, %c0_i32, %c0_i32_0 : i32, i32, i32
  }
  func.func @transform_8(%arg0: i32, %arg1: i32) -> (i32, i32, i32) {
    %c0_i32 = arith.constant 0 : i32
    %c0_i32_0 = arith.constant 0 : i32
    %c0_i32_1 = arith.constant 0 : i32
    return %arg1, %c0_i32, %c0_i32_0 : i32, i32, i32
  }
  func.func @transform_9(%arg0: i32, %arg1: i32) -> (i32, i32, i32) {
    %c0_i32 = arith.constant 0 : i32
    %c0_i32_0 = arith.constant 0 : i32
    %c0_i32_1 = arith.constant 0 : i32
    return %arg1, %c0_i32, %c0_i32_0 : i32, i32, i32
  }
  func.func @transform_10(%arg0: i32, %arg1: i32) -> (i32, i32, i32) {
    %c0_i32 = arith.constant 0 : i32
    %c0_i32_0 = arith.constant 0 : i32
    %c0_i32_1 = arith.constant 0 : i32
    return %arg1, %c0_i32, %c0_i32_0 : i32, i32, i32
  }
  func.func @transform_11(%arg0: i32, %arg1: i32) -> (i32, i32, i32) {
    %c0_i32 = arith.constant 0 : i32
    %c0_i32_0 = arith.constant 0 : i32
    %c0_i32_1 = arith.constant 0 : i32
    return %arg1, %c0_i32, %c0_i32_0 : i32, i32, i32
  }
  func.func @transform_12(%arg0: i32, %arg1: i32) -> (i32, i32, i32) {
    %c0_i32 = arith.constant 0 : i32
    %c0_i32_0 = arith.constant 0 : i32
    %c0_i32_1 = arith.constant 0 : i32
    return %arg1, %c0_i32, %c0_i32_0 : i32, i32, i32
  }
  func.func @transform_13(%arg0: i32, %arg1: i32) -> (i32, i32, i32) {
    %c0_i32 = arith.constant 0 : i32
    %c0_i32_0 = arith.constant 0 : i32
    %c0_i32_1 = arith.constant 0 : i32
    return %arg1, %c0_i32, %c0_i32_0 : i32, i32, i32
  }
  func.func @transform_14(%arg0: i32, %arg1: i32) -> (i32, i32, i32) {
    %c0_i32 = arith.constant 0 : i32
    %c0_i32_0 = arith.constant 0 : i32
    %c0_i32_1 = arith.constant 0 : i32
    return %arg0, %c0_i32, %c0_i32_0 : i32, i32, i32
  }
}

</mosaic_0001>

<bundles_post_ra>
// kernel: tpu_custom_call.1
= control target key start
LH: loop header
LB: loop body
LE: loop exit
PB: predicated region body
PF: predicated region fallthrough
CT: control target
= control target key end

     0   :  { %s2636_s0 = inlined_call_operand.vmem [shape: f32[2,8,32], index: 0, kind: input, shape index: {}]   ;;  %s2637_s1 = inlined_call_operand.vmem [shape: f32[2,1,8], index: 1, kind: input, shape index: {}]   ;;  %s2638_s2 = inlined_call_operand.vmem [shape: bf16[2,12,32,8], index: 2, kind: input, shape index: {}]   ;;  %s2639_s3 = inlined_call_operand.vmem [shape: f32[2,12,1,8], index: 3, kind: input, shape index: {}]   ;;  %s2640_s4 = inlined_call_operand.vmem [shape: bf16[2,4,8,32], index: 4, kind: input, shape index: {}]   ;;  %s2641_s5 = inlined_call_operand.vmem [shape: f32[2,1,32], index: 5, kind: input, shape index: {}]   ;;  %s2642_s6 = inlined_call_operand.vmem [shape: f32[2,1,32], index: 6, kind: input, shape index: {}]   ;;  %s2643_s7 = inlined_call_operand.vmem [shape: f32[2,1,32], index: 7, kind: input, shape index: {}]   ;;  %s2644_s8 = inlined_call_operand.vmem [shape: bf16[2,32,64], index: 8, kind: input, shape index: {}]   ;;  %s2645_s9 = inlined_call_operand.vmem [shape: f32[2,1,64], index: 9, kind: input, shape index: {}]   ;;  %s2646_s10 = inlined_call_operand.vmem [shape: bf16[2,64,32], index: 10, kind: input, shape index: {}]   ;;  %s2647_s11 = inlined_call_operand.vmem [shape: f32[2,1,32], index: 11, kind: input, shape index: {}]   ;;  %s2648_s12 = inlined_call_operand.vmem [shape: f32[2,1,32], index: 12, kind: input, shape index: {}]   ;;  %s2649_s13 = inlined_call_operand.vmem [shape: f32[2,1,32], index: 13, kind: input, shape index: {}]   ;;  %s2650_s14 = inlined_call_operand.hbm [shape: f32[2,8,32], index: 14, kind: output, shape index: {}]  }
   0x1   :  { %2667 = sst [smem:[#allocation20_spill]] %s2636_s0 }
   0x2   :  { %2668 = sst [smem:[#allocation21_spill]] %s2637_s1 }
   0x3   :  { %2669 = sst [smem:[#allocation22_spill]] %s2638_s2 }
   0x4   :  { %2670 = sst [smem:[#allocation23_spill]] %s2639_s3 }
   0x5   :  { %2671 = sst [smem:[#allocation24_spill]] %s2640_s4 }
   0x6   :  { %2672 = sst [smem:[#allocation25_spill]] %s2644_s8 }
   0x7   :  { %2673 = sst [smem:[#allocation26_spill]] %s2649_s13 }
   0x8   :  { %2674 = sst [smem:[#allocation27_spill]] %s2650_s14 }
   0x9   :  { %19 = vsyncpa [#allocation4], 0 }
   0xa   :  { %21 = vsyncpa [#allocation4 + $0x1], 0  ;;  %s2292_s29 = smov 0   ;;  %s2294_s30 = smov 0  }
   0xb   :  { %s2296_s15 = smov 0   ;;  %s2298_s16 = smov 0  }
   0xc   :  { %s2300_s17 = smov 0   ;;  %s2302_s18 = smov 0  }
   0xd   :  { %s2304_s19 = smov 0   ;;  %s2306_s20 = smov 0  }
   0xe LB: > { %2675 = sst [smem:[#allocation6_spill]] %s2186_s29  ;;  %s1805_s21 = sadd.s32 4294967295, %s2214_s20   ;;  %s2214_s20 = sphi %s2306_s20, %s27_s20   ;;  %s2210_s19 = sphi %s2304_s19, %s2721_s19   ;;  %s2206_s18 = sphi %s2302_s18, %s2720_s18   ;;  %s2202_s17 = sphi %s2300_s17, %s2719_s17   ;;  %s2198_s16 = sphi %s2298_s16, %s2718_s16   ;;  %s2194_s15 = sphi %s2296_s15, %s2717_s15   ;;  %s2190_s30 = sphi %s2294_s30, %s2716_s30   ;;  %s2186_s29 = sphi %s2292_s29, %s2715_s29  }
   0xf   : > { %2676 = sst [smem:[#allocation7_spill]] %s2190_s30  ;;  %s1806_s22 = sadd.s32 4294967294, %s2214_s20  }
  0x10   : > { %2677 = sst [smem:[#allocation8_spill]] %s2194_s15  ;;  %s36_s23 = sadd.s32 1, %s2206_s18 }
  0x11   : > { %2678 = sst [smem:[#allocation9_spill]] %s2198_s16  ;;  %p37_p0 = scmp.ge.s32.totalorder %s36_s23, 2 }
  0x12   : > { %2679 = sst [smem:[#allocation10_spill]] %s2202_s17  ;;  %s39_s24 = sadd.s32 1, %s2210_s19 }
  0x13   : > { %2680 = sst [smem:[#allocation11_spill]] %s2206_s18  ;;  %p420_p1 = scmp.ne.s32.totalorder %s2194_s15, %s2190_s30 }
  0x14   : > { %2681 = sst [smem:[#allocation12_spill]] %s2210_s19  ;;  %p421_p2 = scmp.eq.s32.totalorder %s1805_s21, 3 }
  0x15   : > { %2682 = sst [smem:[#allocation13_spill]] %s2214_s20  ;;  %s2723_s23 = smov (%p37_p0, %s36_s23), 0 }
  0x16   : > { %2683 = sst [smem:[#allocation14_spill]] %s2723_s23  ;;  %s2725_s24 = smov (!%p37_p0, %s39_s24), %s2210_s19 }
  0x17   : > { %p2341_p3 = por %p421_p2, %p420_p1  ;;  %p426_p4 = scmp.ne.s32.totalorder %s2190_s30, %s2186_s29 }
  0x18   : > { %p41_p5 = scmp.ge.s32.totalorder %s2725_s24, 2  ;;  %p427_p6 = scmp.eq.s32.totalorder %s1806_s22, 3 }
  0x19   : > { %s2684_s25 = scalar_select %p2341_p3, 1, 0 }
  0x1a   : > { %p1809_p7 = scmp.ge.s32.totalorder %s2214_s20, 1  ;;  %p539_p8 = scmp.lt.s32.totalorder %s2214_s20, 5 }
  0x1b   : > { %2685 = sst [smem:[#allocation15_spill]] %s2684_s25  ;;  %s2727_s24 = smov (%p41_p5, %s2725_s24), 0 }
  0x1c   : > { %2686 = sst [smem:[#allocation16_spill]] %s2727_s24  ;;  %p2351_p9 = por %p427_p6, %p426_p4 }
  0x1d   : > { %p540_p10 = pnand %p1809_p7, %p539_p8  ;;  %s407_s27 = ssub.s32 %s2210_s19, %s2727_s24 }
  0x1e   : > { %s2687_s26 = scalar_select %p2351_p9, 1, 0 }
  0x1f   : > { %s410_s28 = sadd.s32 1, %s2194_s15  ;;  %p408_p11 = scmp.eq.s32.totalorder %s407_s27, 0 }
  0x20   : > { %2688 = sst [smem:[#allocation17_spill]] %s2687_s26  ;;  %543 = sbr.rel (%p540_p10) target bundleno = 1737 (0x6c9), region = 76 }
  0x21   : > { %s2359_s21 = scalar_select %p408_p11, %s2194_s15, %s410_s28  }
  0x23   : > { %2689 = sst [smem:[#allocation18_spill]] %s2359_s21 }
  0x25   : > { %s2653_s22 = sand.u32 1, %s2190_s30   ;;  %p632_p12 = scmp.lt.s32.totalorder %s2202_s17, 1 }
  0x26   : > { %s2365_s23 = sshll.u32 %s2653_s22, 3  ;;  %p639_p13 = scmp.lt.s32.totalorder %s2198_s16, 1 }
  0x27   : > { %s2369_s18 = scalar_select %p632_p12, %s2202_s17, 1 }
  0x28   : > { %s2372_s27 = scalar_select %p639_p13, %s2198_s16, 1 }
  0x29   : > { %2690 = sst [smem:[#allocation19_spill]] %s2369_s18  ;;  %s1811_s28 = sshll.u32 %s2369_s18, 3 }
  0x2a   : > { %s2692_s0 = sld [smem:[#allocation20_spill]]  ;;  %s2004_s29 = smul.u32 192, %s2372_s27 }
  0x2b   : > { %s2005_s20 = smul.u32 12, %s2372_s27  ;;  %s1971_s14 = sshll.u32 %s2372_s27, 4 }
  0x2c   : > { %s2693_s2 = sld [smem:[#allocation22_spill]]  ;;  %s669_s22 = scalar_lea.vmem %s2645_s9, %s2372_s27 }
  0x2d   : > { %s2694_s4 = sld [smem:[#allocation24_spill]]  ;;  %s680_s13 = scalar_lea.vmem %s2648_s12, %s2372_s27 }
  0x2e   : > { %s2695_s3 = sld [smem:[#allocation23_spill]]  ;;  %s631_s19 = scalar_lea.vmem [#allocation3], %s2365_s23 }
  0x2f   : > { %s2696_s8 = sld [smem:[#allocation25_spill]] }
  0x30   : > { %s635_s26 = scalar_lea.vmem %s2692_s0, %s1811_s28  ;;  %s677_s0 = scalar_lea.vmem %s2647_s11, %s2372_s27 }
  0x32   : > { %s2388_s17 = scalar_lea.vmem %s2693_s2, %s2004_s29  ;;  %s2697_s2 = sld [smem:[#allocation26_spill]] }
  0x33   : > { %s2393_s24 = scalar_lea.vmem %s2694_s4, %s1971_s14 }
  0x34   : > { %s2398_s15 = scalar_lea.vmem %s2695_s3, %s2005_s20  ;;  %s1973_s3 = sshll.u32 %s2372_s27, 5 }
  0x35   : > { %s2415_s4 = scalar_lea.vmem %s2696_s8, %s1971_s14  ;;  %s2429_s30 = scalar_lea.vmem %s2646_s10, %s1973_s3 }
  0x36   : > { %s2698_s20 = sld [smem:[#allocation9_spill]] }
  0x38   : > { %s683_s8 = scalar_lea.vmem %s2697_s2, %s2372_s27 }
  0x3c   : > { %p1819_p0 = scmp.ne.s32.totalorder %s2698_s20, 0 }
  0x3e   : > { %688 = sbr.rel (%p1819_p0) target bundleno = 69 (0x45), region = 80 }
  0x43   : > { %v689_v0 = vld [vmem:[%s635_s26] sm:$0xff]  ;;  %vm690_vm0 = vcmask 261120  }
  0x44   : > { %691 = vst.msk [vmem:[#allocation2] sm:$0xff] %vm690_vm0, %v689_v0 }
  0x45 PF: > { %v1975_v1 = vld [vmem:[%s2388_s17 + $0x8] sm:$0xff]  ;;  %v1977_v2 = vld [vmem:[%s2388_s17 + $0x18] sm:$0xff]  ;;  %v1974_v5 = vld [vmem:[%s2388_s17] sm:$0xff]  ;;  %vm808_vm1 = vcmask 261120   ;;  %vm1112_vm2 = vcmask 64512   ;;  %vm1251_vm3 = vcmask 1043456   ;;  %s2702_s28 = scalar_lea.vmem %s2641_s5, %s2372_s27  ;;  %s2703_s18 = scalar_lea.vmem %s2642_s6, %s2372_s27 }
  0x46   : > { %v1979_v3 = vld [vmem:[%s2388_s17 + $0x28] sm:$0xff]  ;;  %v1981_v4 = vld [vmem:[%s2388_s17 + $0x38] sm:$0xff]  ;;  %818 = vmatpush.bf16.msra.mxu0 %v1975_v1  ;;  %843 = vmatpush.bf16.msra.mxu1 %v1977_v2  ;;  %v1976_v6 = vld [vmem:[%s2388_s17 + $0x10] sm:$0xff]  ;;  %s2699_s2 = sld [smem:[#allocation19_spill]]  ;;  %s2704_s14 = scalar_lea.vmem %s2643_s7, %s2372_s27  ;;  %vm1531_vm8 = vcmask 523264  }
  0x47   : > { %868 = vmatpush.bf16.msra.mxu2 %v1979_v3  ;;  %893 = vmatpush.bf16.msra.mxu3 %v1981_v4  ;;  %v1978_v8 = vld [vmem:[%s2388_s17 + $0x20] sm:$0xff]  ;;  %v1980_v9 = vld [vmem:[%s2388_s17 + $0x30] sm:$0xff]  ;;  %v1983_v10 = vld [vmem:[%s2388_s17 + $0x48] sm:$0xff]  ;;  %s2700_s26 = sld [smem:[#allocation21_spill]] }
  0x48   : > { %v1985_v11 = vld [vmem:[%s2388_s17 + $0x58] sm:$0xff]  ;;  %v1987_v13 = vld [vmem:[%s2388_s17 + $0x68] sm:$0xff]  ;;  %v1982_v15 = vld [vmem:[%s2388_s17 + $0x40] sm:$0xff] }
  0x49   : > { %v1989_v14 = vld [vmem:[%s2388_s17 + $0x78] sm:$0xff]  ;;  %v1984_v16 = vld [vmem:[%s2388_s17 + $0x50] sm:$0xff]  ;;  %v1986_v17 = vld [vmem:[%s2388_s17 + $0x60] sm:$0xff] }
  0x4a   : > { %819 = vmatpush.bf16.msra.mxu0 %v1974_v5  ;;  %844 = vmatpush.bf16.msra.mxu1 %v1976_v6  ;;  %v1988_v18 = vld [vmem:[%s2388_s17 + $0x70] sm:$0xff]  ;;  %v1995_v19 = vld [vmem:[%s2388_s17 + $0xa8] sm:$0xff]  ;;  %v1993_v21 = vld [vmem:[%s2388_s17 + $0x98] sm:$0xff] }
  0x4b   : > { %v2447_v7 = vld [vmem:[#allocation2] sm:$0xff]  ;;  %869 = vmatpush.bf16.msra.mxu2 %v1978_v8  ;;  %894 = vmatpush.bf16.msra.mxu3 %v1980_v9  ;;  %v1991_v20 = vld [vmem:[%s2388_s17 + $0x88] sm:$0xff]  ;;  %v1992_v24 = vld [vmem:[%s2388_s17 + $0x90] sm:$0xff] }
  0x4c   : > { %v759_v12 = vpack.c.bf16 %v2447_v7, %v2447_v7  ;;  %v1994_v22 = vld [vmem:[%s2388_s17 + $0xa0] sm:$0xff]  ;;  %v1997_v25 = vld [vmem:[%s2388_s17 + $0xb8] sm:$0xff]  ;;  %v1996_v26 = vld [vmem:[%s2388_s17 + $0xb0] sm:$0xff] }
  0x4d   : > { %v1990_v23 = vld [vmem:[%s2388_s17 + $0x80] sm:$0xff]  ;;  %v2086_v8 = vld [vmem:[%s2398_s15 + $0x8] ss:$0 sm:$0xff]  ;;  %v2087_v9 = vld [vmem:[%s2398_s15 + $0x9] ss:$0 sm:$0xff]  ;;  %s2701_s21 = scalar_lea.vmem %s2700_s26, %s2699_s2 }
  0x4e   : > { %918 = vmatpush.bf16.msrb.mxu0 %v1983_v10  ;;  %943 = vmatpush.bf16.msrb.mxu1 %v1985_v11  ;;  %v2082_v33 = vld [vmem:[%s2398_s15 + $0x4] ss:$0 sm:$0xff]  ;;  %v2083_v34 = vld [vmem:[%s2398_s15 + $0x5] ss:$0 sm:$0xff]  ;;  %v2079_v41 = vld [vmem:[%s2398_s15 + $0x1] ss:$0 sm:$0xff] }
  0x4f   : > { %1828 = vmatmul.msk.bf16.vlgmr.msra.gmra.mxu0 %vm808_vm1, %v759_v12  ;;  %1837 = vmatmul.msk.bf16.vlgmr.msra.gmra.mxu1 %vm808_vm1, %v759_v12  ;;  %v2078_v44 = vld [vmem:[%s2398_s15] ss:$0 sm:$0xff]  ;;  %v2084_v45 = vld [vmem:[%s2398_s15 + $0x6] ss:$0 sm:$0xff]  ;;  %v2085_v46 = vld [vmem:[%s2398_s15 + $0x7] ss:$0 sm:$0xff] }
  0x50   : > { %1846 = vmatmul.msk.bf16.vlgmr.msra.gmra.mxu2 %vm808_vm1, %v759_v12  ;;  %1855 = vmatmul.msk.bf16.vlgmr.msra.gmra.mxu3 %vm808_vm1, %v759_v12  ;;  %v2080_v58 = vld [vmem:[%s2398_s15 + $0x2] ss:$0 sm:$0xff]  ;;  %v2081_v59 = vld [vmem:[%s2398_s15 + $0x3] ss:$0 sm:$0xff] }
  0x51   : > { %968 = vmatpush.bf16.msrb.mxu2 %v1987_v13  ;;  %993 = vmatpush.bf16.msrb.mxu3 %v1989_v14  ;;  %v2088_v14 = vld [vmem:[%s2398_s15 + $0xa] ss:$0 sm:$0xff] }
  0x52   : > { %919 = vmatpush.bf16.msrb.mxu0 %v1982_v15  ;;  %944 = vmatpush.bf16.msrb.mxu1 %v1984_v16 }
  0x55   : > { %969 = vmatpush.bf16.msrb.mxu2 %v1986_v17  ;;  %994 = vmatpush.bf16.msrb.mxu3 %v1988_v18 }
  0x56   : > { %1018 = vmatpush.bf16.msra.mxu0 %v1991_v20  ;;  %1043 = vmatpush.bf16.msra.mxu1 %v1993_v21 }
  0x59   : > { %1068 = vmatpush.bf16.msra.mxu2 %v1995_v19  ;;  %1093 = vmatpush.bf16.msra.mxu3 %v1997_v25  ;;  %v2089_v25 = vld [vmem:[%s2398_s15 + $0xb] ss:$0 sm:$0xff] }
  0x5a   : > { %1019 = vmatpush.bf16.msra.mxu0 %v1990_v23  ;;  %1044 = vmatpush.bf16.msra.mxu1 %v1992_v24 }
  0x5d   : > { %1069 = vmatpush.bf16.msra.mxu2 %v1994_v22  ;;  %1094 = vmatpush.bf16.msra.mxu3 %v1996_v26 }
  0x5f   : > { %1864 = vmatmul.msk.bf16.vlgmr.msrb.gmra.mxu0 %vm808_vm1, %v759_v12  ;;  %1873 = vmatmul.msk.bf16.vlgmr.msrb.gmra.mxu1 %vm808_vm1, %v759_v12 }
  0x60   : > { %1882 = vmatmul.msk.bf16.vlgmr.msrb.gmra.mxu2 %vm808_vm1, %v759_v12  ;;  %1891 = vmatmul.msk.bf16.vlgmr.msrb.gmra.mxu3 %vm808_vm1, %v759_v12 }
  0x6f   : > { %1900 = vmatmul.msk.bf16.vlgmr.msra.gmra.mxu0 %vm808_vm1, %v759_v12  ;;  %1909 = vmatmul.msk.bf16.vlgmr.msra.gmra.mxu1 %vm808_vm1, %v759_v12 }
  0x70   : > { %1918 = vmatmul.msk.bf16.vlgmr.msra.gmra.mxu2 %vm808_vm1, %v759_v12  ;;  %1927 = vmatmul.msk.bf16.vlgmr.msra.gmra.mxu3 %vm808_vm1, %v759_v12 }
  0xcc   : > { %v821_v27 = vpop.f32.mrf.mxu0  ;;  %v846_v28 = vpop.f32.mrf.mxu1 }
  0xcd   : > { %v847_v49 = vadd.f32 %v2079_v41, %v846_v28  ;;  %v822_v52 = vadd.f32 %v2078_v44, %v821_v27 }
  0xcf   : > { %v1101_v57 = vpack.c.bf16 %v847_v49, %v847_v49  ;;  %v1100_v62 = vpack.c.bf16 %v822_v52, %v822_v52 }
  0xd3   : > { %v871_v29 = vpop.f32.mrf.mxu2  ;;  %v896_v30 = vpop.f32.mrf.mxu3 }
  0xd4   : > { %v823_v31 = vpop.f32.mrf.mxu0  ;;  %v848_v32 = vpop.f32.mrf.mxu1  ;;  %v872_v1 = vadd.f32 %v2080_v58, %v871_v29  ;;  %v897_v2 = vadd.f32 %v2081_v59, %v896_v30 }
  0xd5   : > { %v2090_v32 = vld [vmem:[%s2701_s21] ss:$0 sm:$0xff]  ;;  %s2706_s21 = sld [smem:[#allocation9_spill]] }
  0xd6   : > { %v1102_v5 = vpack.c.bf16 %v872_v1, %v872_v1  ;;  %v1103_v6 = vpack.c.bf16 %v897_v2, %v897_v2 }
  0xdb   : > { %v873_v35 = vpop.f32.mrf.mxu2  ;;  %v898_v36 = vpop.f32.mrf.mxu3  ;;  %p1966_p1 = scmp.ne.s32.totalorder %s2706_s21, 1 }
  0xdc   : > { %v921_v37 = vpop.f32.mrf.mxu0  ;;  %v946_v38 = vpop.f32.mrf.mxu1 }
  0xdd   : > { %v922_v39 = vadd.f32 %v2082_v33, %v921_v37  ;;  %v947_v40 = vadd.f32 %v2083_v34, %v946_v38 }
  0xdf   : > { %v1104_v42 = vpack.c.bf16 %v922_v39, %v922_v39  ;;  %v1105_v43 = vpack.c.bf16 %v947_v40, %v947_v40 }
  0xe1   : > { %v1117_v47 = vsel %vm1112_vm2, %v1104_v42, 0  ;;  %v1136_v48 = vsel %vm1112_vm2, %v1105_v43, 0 }
  0xe2   : > { %1126 = vmatpush.bf16.xpose.msrb.mxu0 %v1117_v47  ;;  %1145 = vmatpush.bf16.xpose.msrb.mxu1 %v1136_v48 }
  0xe3   : > { %v971_v50 = vpop.f32.mrf.mxu2  ;;  %v996_v51 = vpop.f32.mrf.mxu3 }
  0xe4   : > { %v972_v53 = vadd.f32 %v2084_v45, %v971_v50  ;;  %v997_v54 = vadd.f32 %v2085_v46, %v996_v51  ;;  %v923_v55 = vpop.f32.mrf.mxu0  ;;  %v948_v56 = vpop.f32.mrf.mxu1 }
  0xe6   : > { %v1106_v60 = vpack.c.bf16 %v972_v53, %v972_v53  ;;  %v1107_v61 = vpack.c.bf16 %v997_v54, %v997_v54 }
  0xe8   : > { %v1155_v63 = vsel %vm1112_vm2, %v1106_v60, 0  ;;  %v1174_v0 = vsel %vm1112_vm2, %v1107_v61, 0 }
  0xe9   : > { %1164 = vmatpush.bf16.xpose.msrb.mxu2 %v1155_v63  ;;  %1183 = vmatpush.bf16.xpose.msrb.mxu3 %v1174_v0 }
  0xea   : > { %1928 = vmatmul.msk.bf16.vlgmr.msrb.gmra.mxu0 %vm1112_vm2, %v1100_v62  ;;  %1929 = vmatmul.msk.bf16.vlgmr.msrb.gmra.mxu1 %vm1112_vm2, %v1101_v57 }
  0xeb   : > { %v973_v3 = vpop.f32.mrf.mxu2  ;;  %v998_v4 = vpop.f32.mrf.mxu3 }
  0xec   : > { %v1021_v10 = vpop.f32.mrf.mxu0  ;;  %v1046_v11 = vpop.f32.mrf.mxu1 }
  0xed   : > { %v1022_v12 = vadd.f32 %v2086_v8, %v1021_v10  ;;  %v1047_v13 = vadd.f32 %v2087_v9, %v1046_v11 }
  0xef   : > { %v1108_v15 = vpack.c.bf16 %v1022_v12, %v1022_v12  ;;  %v1109_v16 = vpack.c.bf16 %v1047_v13, %v1047_v13 }
  0xf0   : > { %1930 = vmatmul.msk.bf16.vlgmr.msrb.gmra.mxu2 %vm1112_vm2, %v1102_v5  ;;  %1931 = vmatmul.msk.bf16.vlgmr.msrb.gmra.mxu3 %vm1112_vm2, %v1103_v6 }
  0xf1   : > { %v1253_v18 = vsel %vm1251_vm3, %v1108_v15, 0  ;;  %v1272_v19 = vsel %vm1251_vm3, %v1109_v16, 0 }
  0xf2   : > { %1262 = vmatpush.bf16.msra.mxu0 %v1253_v18  ;;  %1281 = vmatpush.bf16.msra.mxu1 %v1272_v19 }
  0xf3   : > { %v1071_v17 = vpop.f32.mrf.mxu2  ;;  %v1096_v26 = vpop.f32.mrf.mxu3 }
  0xf4   : > { %v1072_v20 = vadd.f32 %v2088_v14, %v1071_v17  ;;  %v1023_v22 = vpop.f32.mrf.mxu0  ;;  %v1048_v23 = vpop.f32.mrf.mxu1  ;;  %v1097_v28 = vadd.f32 %v2089_v25, %v1096_v26  ;;  %v753_v26 = vld [vmem:[%s2393_s24] sm:$0xf] }
  0xf6   : > { %v1110_v21 = vpack.c.bf16 %v1072_v20, %v1072_v20  ;;  %v1111_v29 = vpack.c.bf16 %v1097_v28, %v1097_v28  ;;  %v754_v28 = vld [vmem:[%s2393_s24 + $0x4] sm:$0xf] }
  0xf8   : > { %v1291_v24 = vsel %vm1251_vm3, %v1110_v21, 0  ;;  %v1310_v30 = vsel %vm1251_vm3, %v1111_v29, 0  ;;  %v1352_v29 = vsel %vm1251_vm3, %v754_v28, 0  ;;  %v2093_v28 = vld [vmem:[%s2704_s14] ss:$0 sm:$0xff] }
  0xf9   : > { %1300 = vmatpush.bf16.msra.mxu2 %v1291_v24  ;;  %1319 = vmatpush.bf16.msra.mxu3 %v1310_v30  ;;  %v755_v30 = vld [vmem:[%s2393_s24 + $0x8] sm:$0xf] }
  0xfa   : > { %1361 = vmatpush.bf16.msrb.mxu1 %v1352_v29 }
  0xfb   : > { %v1073_v27 = vpop.f32.mrf.mxu2  ;;  %v1098_v31 = vpop.f32.mrf.mxu3 }
  0xfc   : > { %v1333_v27 = vsel %vm1251_vm3, %v753_v26, 0  ;;  %v1371_v31 = vsel %vm1251_vm3, %v755_v30, 0  ;;  %v2092_v26 = vld [vmem:[%s2703_s18] ss:$0 sm:$0xff] }
  0xfd   : > { %1342 = vmatpush.bf16.msrb.mxu0 %v1333_v27  ;;  %1380 = vmatpush.bf16.msrb.mxu2 %v1371_v31 }
 0x167   : > { %v1128_v33 = vpop.f32.mrf.mxu0  ;;  %v1147_v34 = vpop.f32.mrf.mxu1 }
 0x168   : > { %v1189_v35 = vmul.f32 0.35355338, %v1128_v33  ;;  %v1190_v37 = vmul.f32 0.35355338, %v1147_v34 }
 0x16a   : > { %v1196_v36 = vadd.f32 %v2090_v32, %v1189_v35  ;;  %v1197_v41 = vadd.f32 %v2090_v32, %v1190_v37 }
 0x16c   : > { %v1200_v38 = vsel %vm1112_vm2, %v1196_v36, -inf  ;;  %v1203_v45 = vsel %vm1112_vm2, %v1197_v41, -inf }
 0x16d   : > { %1201 = vmax.xlane.f32.xlu1 %v1200_v38 }
 0x16f   : > { %v1130_v39 = vpop.f32.mrf.mxu0  ;;  %v1149_v40 = vpop.f32.mrf.mxu1 }
 0x173   : > { %v1166_v42 = vpop.f32.mrf.mxu2  ;;  %v1185_v43 = vpop.f32.mrf.mxu3 }
 0x174   : > { %v1191_v44 = vmul.f32 0.35355338, %v1166_v42  ;;  %v1192_v47 = vmul.f32 0.35355338, %v1185_v43 }
 0x175   : > { %1204 = vmax.xlane.f32.xlu1 %v1203_v45 }
 0x176   : > { %v1198_v46 = vadd.f32 %v2090_v32, %v1191_v44  ;;  %v1199_v51 = vadd.f32 %v2090_v32, %v1192_v47  ;;  %v756_v32 = vld [vmem:[%s2393_s24 + $0xc] sm:$0xf] }
 0x177   : > { %v1390_v33 = vsel %vm1251_vm3, %v756_v32, 0 }
 0x178   : > { %v1206_v48 = vsel %vm1112_vm2, %v1198_v46, -inf  ;;  %v1209_v52 = vsel %vm1112_vm2, %v1199_v51, -inf  ;;  %1399 = vmatpush.bf16.msrb.mxu3 %v1390_v33  ;;  %v2001_v33 = vld [vmem:[%s2429_s30 + $0x8] sm:$0xff] }
 0x179   : > { %1207 = vmax.xlane.f32.xlu0 %v1206_v48 }
 0x17b   : > { %v1168_v49 = vpop.f32.mrf.mxu2  ;;  %v1187_v50 = vpop.f32.mrf.mxu3 }
 0x181   : > { %1210 = vmax.xlane.f32.xlu0 %v1209_v52 }
 0x1e0   : > { %v1202_v53 = vpop.xlane.xlu1 %1201 }
 0x1e1   : > { %v1212_v54 = vsub.f32 %v1196_v36, %v1202_v53 }
 0x1e3   : > { %v1216_v55 = vmul.f32 1.442695, %v1212_v54 }
 0x1e5   : > { %2098 = vpow2.f32 %v1216_v55 }
 0x1e8   : > { %v1205_v56 = vpop.xlane.xlu1 %1204 }
 0x1e9   : > { %v1213_v57 = vsub.f32 %v1197_v41, %v1205_v56 }
 0x1eb   : > { %v2099_v58 = vpop.eup %2098  ;;  %v1218_v59 = vmul.f32 1.442695, %v1213_v57 }
 0x1ec   : > { %v1208_v60 = vpop.xlane.xlu0 %1207  ;;  %v1224_v61 = vsel %vm1112_vm2, %v2099_v58, 0.0 }
 0x1ed   : > { %2100 = vpow2.f32 %v1218_v59  ;;  %v1214_v62 = vsub.f32 %v1198_v46, %v1208_v60  ;;  %1225 = vadd.xlane.f32.xlu0 %v1224_v61 }
 0x1ef   : > { %v1220_v63 = vmul.f32 1.442695, %v1214_v62 }
 0x1f1   : > { %2102 = vpow2.f32 %v1220_v63 }
 0x1f3   : > { %v2101_v0 = vpop.eup %2100 }
 0x1f4   : > { %v1211_v1 = vpop.xlane.xlu0 %1210  ;;  %v1227_v2 = vsel %vm1112_vm2, %v2101_v0, 0.0 }
 0x1f5   : > { %v1215_v3 = vsub.f32 %v1199_v51, %v1211_v1  ;;  %1228 = vadd.xlane.f32.xlu1 %v1227_v2  ;;  %v2216_v1 = vmov 32.0  }
 0x1f7   : > { %v2103_v4 = vpop.eup %2102  ;;  %v1222_v5 = vmul.f32 1.442695, %v1215_v3 }
 0x1f8   : > { %v1230_v6 = vsel %vm1112_vm2, %v2103_v4, 0.0 }
 0x1f9   : > { %2104 = vpow2.f32 %v1222_v5  ;;  %1231 = vadd.xlane.f32.xlu2 %v1230_v6 }
 0x1ff   : > { %v2105_v8 = vpop.eup %2104 }
 0x200   : > { %v1233_v9 = vsel %vm1112_vm2, %v2105_v8, 0.0 }
 0x201   : > { %1234 = vadd.xlane.f32.xlu2 %v1233_v9 }
 0x260   : > { %v1226_v10 = vpop.xlane.xlu0 %1225 }
 0x261   : > { %2106 = vrcp.f32 %v1226_v10 }
 0x267   : > { %v2107_v11 = vpop.eup %2106 }
 0x268   : > { %v1240_v12 = vmul.f32 %v2107_v11, %v2099_v58  ;;  %v1229_v13 = vpop.xlane.xlu1 %1228  ;;  %v2091_v58 = vld [vmem:[%s2702_s28] ss:$0 sm:$0xff] }
 0x269   : > { %2108 = vrcp.f32 %v1229_v13  ;;  %v1999_v13 = vld [vmem:[%s2415_s4 + $0x8] sm:$0xff] }
 0x26a   : > { %v1244_v14 = vpack.c.bf16 %v1240_v12, %v1240_v12 }
 0x26c   : > { %v1232_v15 = vpop.xlane.xlu2 %1231  ;;  %1932 = vmatmul.msk.bf16.vlgmr.msra.gmra.mxu0 %vm1112_vm2, %v1244_v14  ;;  %v1998_v14 = vld [vmem:[%s2415_s4] sm:$0xff] }
 0x26d   : > { %2110 = vrcp.f32 %v1232_v15  ;;  %1486 = vmatpush.bf16.msra.mxu0 %v1999_v13  ;;  %v2003_v15 = vld [vmem:[%s2429_s30 + $0x18] sm:$0xff] }
 0x26f   : > { %v2109_v16 = vpop.eup %2108 }
 0x270   : > { %v1241_v17 = vmul.f32 %v2109_v16, %v2101_v0 }
 0x271   : > { %1487 = vmatpush.bf16.msra.mxu0 %v1998_v14 }
 0x272   : > { %v1245_v18 = vpack.c.bf16 %v1241_v17, %v1241_v17 }
 0x273   : > { %v2111_v19 = vpop.eup %2110 }
 0x274   : > { %v1242_v20 = vmul.f32 %v2111_v19, %v2103_v4  ;;  %v1235_v21 = vpop.xlane.xlu2 %1234  ;;  %1933 = vmatmul.msk.bf16.vlgmr.msra.gmra.mxu1 %vm1112_vm2, %v1245_v18  ;;  %v2002_v18 = vld [vmem:[%s2429_s30 + $0x10] sm:$0xff] }
 0x275   : > { %2112 = vrcp.f32 %v1235_v21  ;;  %1539 = vmatpush.bf16.msra.mxu1 %v2003_v15 }
 0x276   : > { %v1246_v22 = vpack.c.bf16 %v1242_v20, %v1242_v20  ;;  %2114 = vrcp.f32 %v2216_v1 }
 0x278   : > { %1934 = vmatmul.msk.bf16.vlgmr.msra.gmra.mxu2 %vm1112_vm2, %v1246_v22 }
 0x279   : > { %1540 = vmatpush.bf16.msra.mxu1 %v2002_v18 }
 0x27b   : > { %v2113_v23 = vpop.eup %2112 }
 0x27c   : > { %v1243_v24 = vmul.f32 %v2113_v23, %v2105_v8  ;;  %v2115_v2 = vpop.eup %2114 }
 0x27d   : > { %v1423_v3 = vmul.f32 32.0, %v2115_v2  ;;  %vm1427_vm4 = vweird.f32 %v2115_v2  ;;  %1541 = vmatpush.bf16.msra.mxu1 %v2001_v33 }
 0x27e   : > { %v1247_v25 = vpack.c.bf16 %v1243_v24, %v1243_v24 }
 0x27f   : > { %v1424_v4 = vsub.f32 1.0, %v1423_v3 }
 0x280   : > { %1935 = vmatmul.msk.bf16.vlgmr.msra.gmra.mxu3 %vm1112_vm2, %v1247_v25 }
 0x281   : > { %v1425_v5 = vmul.f32 %v2115_v2, %v1424_v4 }
 0x283   : > { %v1426_v6 = vadd.f32 %v2115_v2, %v1425_v5 }
 0x285   : > { %v1428_v8 = vsel %vm1427_vm4, %v2115_v2, %v1426_v6 }
 0x2e9   : > { %v1264_v34 = vpop.f32.mrf.mxu0 }
 0x2ea   : > { %v1325_v35 = vpack.c.bf16 %v1264_v34, %v1264_v34  ;;  %v2000_v34 = vld [vmem:[%s2429_s30] sm:$0xff] }
 0x2eb   : > { %1542 = vmatpush.bf16.msra.mxu1 %v2000_v34 }
 0x2ec   : > { %1936 = vmatmul.msk.bf16.vlgmr.msrb.gmra.mxu0 %vm1112_vm2, %v1325_v35  ;;  %v2094_v35 = vld [vmem:[%s669_s22] ss:$0 sm:$0xff] }
 0x2f1   : > { %v1266_v36 = vpop.f32.mrf.mxu0  ;;  %v1283_v37 = vpop.f32.mrf.mxu1 }
 0x2f2   : > { %v1326_v38 = vpack.c.bf16 %v1283_v37, %v1283_v37 }
 0x2f4   : > { %1937 = vmatmul.msk.bf16.vlgmr.msrb.gmra.mxu1 %vm1112_vm2, %v1326_v38 }
 0x2f9   : > { %v1285_v39 = vpop.f32.mrf.mxu1 }
 0x2fb   : > { %v1302_v40 = vpop.f32.mrf.mxu2 }
 0x2fc   : > { %v1327_v41 = vpack.c.bf16 %v1302_v40, %v1302_v40 }
 0x2fe   : > { %1938 = vmatmul.msk.bf16.vlgmr.msrb.gmra.mxu2 %vm1112_vm2, %v1327_v41  ;;  %v2095_v41 = vld [vmem:[%s677_s0] ss:$0 sm:$0xff] }
 0x303   : > { %v1304_v42 = vpop.f32.mrf.mxu2  ;;  %v1321_v43 = vpop.f32.mrf.mxu3 }
 0x304   : > { %v1328_v44 = vpack.c.bf16 %v1321_v43, %v1321_v43 }
 0x306   : > { %1939 = vmatmul.msk.bf16.vlgmr.msrb.gmra.mxu3 %vm1112_vm2, %v1328_v44 }
 0x30b   : > { %v1323_v45 = vpop.f32.mrf.mxu3 }
 0x369   : > { %v1344_v46 = vpop.f32.mrf.mxu0 }
 0x36a   : > { %v1405_v52 = vsel %vm808_vm1, %v1344_v46, 0.0 }
 0x371   : > { %v1346_v47 = vpop.f32.mrf.mxu0  ;;  %v1363_v48 = vpop.f32.mrf.mxu1 }
 0x372   : > { %v1406_v51 = vsel %vm808_vm1, %v1363_v48, 0.0 }
 0x373   : > { %v1407_v54 = vadd.f32 %v1406_v51, %v1405_v52 }
 0x379   : > { %v1365_v49 = vpop.f32.mrf.mxu1 }
 0x381   : > { %v1382_v50 = vpop.f32.mrf.mxu2 }
 0x382   : > { %v1408_v53 = vsel %vm808_vm1, %v1382_v50, 0.0 }
 0x383   : > { %v1409_v55 = vadd.f32 %v1408_v53, %v1407_v54 }
 0x389   : > { %v1384_v56 = vpop.f32.mrf.mxu2  ;;  %v1401_v57 = vpop.f32.mrf.mxu3 }
 0x38a   : > { %v1410_v59 = vsel %vm808_vm1, %v1401_v57, 0.0 }
 0x38b   : > { %v1411_v60 = vadd.f32 %v1410_v59, %v1409_v55 }
 0x38d   : > { %v1415_v61 = vadd.f32 %v2091_v58, %v1411_v60 }
 0x38f   : > { %v1416_v62 = vadd.f32 %v1415_v61, %v2447_v7  ;;  %v2096_v61 = vld [vmem:[%s680_s13] ss:$0 sm:$0xff] }
 0x391   : > { %v1403_v63 = vpop.f32.mrf.mxu3  ;;  %v1419_v0 = vsel %vm808_vm1, %v1416_v62, 0.0 }
 0x392   : > { %1420 = vadd.xlane.f32.xlu2 %v1419_v0  ;;  %v2097_v63 = vld [vmem:[%s683_s8] ss:$0 sm:$0xff] }
 0x405   : > { %v1421_v9 = vpop.xlane.xlu2 %1420 }
 0x406   : > { %v1429_v10 = vmul.f32 %v1428_v8, %v1421_v9 }
 0x408   : > { %v1430_v7 = vsub.f32 %v1416_v62, %v1429_v10 }
 0x40a   : > { %v1431_v11 = vmul.f32 %v1430_v7, %v1430_v7 }
 0x40c   : > { %v1432_v12 = vsel %vm808_vm1, %v1431_v11, 0.0 }
 0x40d   : > { %1433 = vadd.xlane.f32.xlu0 %v1432_v12 }
 0x480   : > { %v1434_v16 = vpop.xlane.xlu0 %1433 }
 0x481   : > { %v1435_v17 = vmul.f32 %v1434_v16, %v1428_v8 }
 0x483   : > { %v1436_v19 = vadd.f32 1e-05, %v1435_v17 }
 0x485   : > { %2116 = vrsqrt.f32 %v1436_v19  ;;  %vm1443_vm6 = vweird.f32 %v1436_v19 }
 0x48b   : > { %v2117_v20 = vpop.eup %2116 }
 0x48c   : > { %v1438_v21 = vmul.f32 %v2117_v20, %v1436_v19  ;;  %vm1444_vm5 = vweird.f32 %v2117_v20 }
 0x48d   : > { %vm1445_vm7 = vmor %vm1443_vm6, %vm1444_vm5 }
 0x48e   : > { %v1439_v22 = vmul.f32 %v2117_v20, %v1438_v21 }
 0x490   : > { %v1440_v23 = vmul.f32 0.5, %v1439_v22 }
 0x492   : > { %v1441_v24 = vsub.f32 1.5, %v1440_v23 }
 0x494   : > { %v1442_v25 = vmul.f32 %v2117_v20, %v1441_v24 }
 0x496   : > { %v1446_v27 = vsel %vm1445_vm7, %v2117_v20, %v1442_v25 }
 0x497   : > { %v1447_v29 = vmul.f32 %v1446_v27, %v1430_v7 }
 0x499   : > { %v1451_v30 = vmul.f32 %v2092_v26, %v1447_v29 }
 0x49b   : > { %v1455_v31 = vadd.f32 %v2093_v28, %v1451_v30 }
 0x49d   : > { %v1456_v32 = vpack.c.bf16 %v1455_v31, %v1455_v31 }
 0x49f   : > { %1948 = vmatmul.msk.bf16.vlgmr.msra.gmra.mxu0 %vm808_vm1, %v1456_v32 }
 0x51c   : > { %v1489_v36 = vpop.f32.mrf.mxu0 }
 0x51d   : > { %v1490_v37 = vadd.f32 %v2094_v35, %v1489_v36 }
 0x51f   : > { %v1493_v38 = vmax.f32 %v1490_v37, 0.0 }
 0x521   : > { %v1494_v39 = vpack.c.bf16 %v1493_v38, %v1493_v38 }
 0x523   : > { %1965 = vmatmul.msk.bf16.vlgmr.msra.gmra.mxu1 %vm1531_vm8, %v1494_v39 }
 0x524   : > { %v1491_v40 = vpop.f32.mrf.mxu0 }
 0x5a0   : > { %v1544_v42 = vpop.f32.mrf.mxu1 }
 0x5a1   : > { %v1545_v43 = vadd.f32 %v2095_v41, %v1544_v42 }
 0x5a3   : > { %v1548_v44 = vadd.f32 %v1545_v43, %v1455_v31 }
 0x5a5   : > { %v1551_v45 = vsel %vm808_vm1, %v1548_v44, 0.0 }
 0x5a6   : > { %1552 = vadd.xlane.f32.xlu1 %v1551_v45 }
 0x5a8   : > { %v1546_v46 = vpop.f32.mrf.mxu1 }
 0x619   : > { %v1553_v47 = vpop.xlane.xlu1 %1552 }
 0x61a   : > { %v1554_v48 = vmul.f32 %v1553_v47, %v1428_v8 }
 0x61c   : > { %v1555_v49 = vsub.f32 %v1548_v44, %v1554_v48 }
 0x61e   : > { %v1556_v50 = vmul.f32 %v1555_v49, %v1555_v49 }
 0x620   : > { %v1557_v51 = vsel %vm808_vm1, %v1556_v50, 0.0 }
 0x621   : > { %1558 = vadd.xlane.f32.xlu2 %v1557_v51 }
 0x694   : > { %v1559_v52 = vpop.xlane.xlu2 %1558 }
 0x695   : > { %v1560_v53 = vmul.f32 %v1559_v52, %v1428_v8 }
 0x697   : > { %v1561_v54 = vadd.f32 1e-05, %v1560_v53 }
 0x699   : > { %2118 = vrsqrt.f32 %v1561_v54  ;;  %vm1568_vm10 = vweird.f32 %v1561_v54 }
 0x69f   : > { %v2119_v55 = vpop.eup %2118 }
 0x6a0   : > { %v1563_v56 = vmul.f32 %v2119_v55, %v1561_v54  ;;  %vm1569_vm9 = vweird.f32 %v2119_v55 }
 0x6a1   : > { %vm1570_vm11 = vmor %vm1568_vm10, %vm1569_vm9 }
 0x6a2   : > { %v1564_v57 = vmul.f32 %v2119_v55, %v1563_v56 }
 0x6a4   : > { %v1565_v58 = vmul.f32 0.5, %v1564_v57 }
 0x6a6   : > { %v1566_v59 = vsub.f32 1.5, %v1565_v58 }
 0x6a8   : > { %v1567_v60 = vmul.f32 %v2119_v55, %v1566_v59 }
 0x6aa   : > { %v1571_v62 = vsel %vm1570_vm11, %v2119_v55, %v1567_v60 }
 0x6ab   : > { %v1572_v0 = vmul.f32 %v1571_v62, %v1555_v49 }
 0x6ad   : > { %v1576_v1 = vmul.f32 %v2096_v61, %v1572_v0  ;;  %1585 = sbr.rel (%p1966_p1) target bundleno = 1715 (0x6b3), region = 84 }
 0x6af   : > { %v1580_v2 = vadd.f32 %v2097_v63, %v1576_v1 }
 0x6b1   : > { %1581 = vst.msk [vmem:[#allocation2] sm:$0xff] %vm808_vm1, %v1580_v2 }
 0x6b2   : > { %1586 = vst.msk [vmem:[%s631_s19] sm:$0xff] %vm808_vm1, %v1580_v2 }
 0x6b3 PF: > { %s2707_s13 = sld [smem:[#allocation10_spill]]  ;;  %s1600_s18 = sshll.u32 %s631_s19, 4  ;;  %s1601_s18 = int_to_ptr.vmem [resolvable:$true] %s1600_s18 }
 0x6b4   : > { %s2708_s24 = sld [smem:[#allocation7_spill]] }
 0x6b5   : > { %s2710_s4 = sld [smem:[#allocation27_spill]] }
 0x6b9   : > { %s1968_s28 = sshll.u32 %s2707_s13, 3 }
 0x6ba   : > { %s2711_s25 = sand.u32 1, %s2708_s24  }
 0x6bb   : > { %s1598_s1 = scalar_lea.hbm %s2710_s4, %s1968_s28  ;;  %s1588_s14 = scalar_lea.sflag [#allocation4], %s2711_s25 }
 0x6bc   : > { %s1602_s29 = sshll.u32 %s1598_s1, 4  ;;  %s2140_s0 = scalar_lea.hbm %s2710_s4, 16  ;;  %s1603_s29 = int_to_ptr.hbm [resolvable:$true] %s1602_s29 }
 0x6bd   : > { %s2134_s16 = sshra.s32 %s1603_s29, 4  ;;  %s2135_s16 = int_to_ptr.hbm [resolvable:$true] %s2134_s16 }
 0x6be   : > { %s2136_s20 = scalar_lea.hbm %s2135_s16, 8  ;;  %p2141_p6 = scmp.lt.s32.totalorder %s2135_s16, %s2710_s4 }
 0x6bf   : > { %p2137_p2 = scmp.ne.s32.totalorder %s2135_s16, %s2136_s20  ;;  %p2142_p7 = scmp.lt.s32.totalorder %s2140_s0, %s2136_s20 }
 0x6c1   : > { %p2138_p4 = pnand %p2137_p2, %p2341_p3  ;;  %p2143_p8 = por %p2142_p7, %p2141_p6 }
 0x6c3   : > { %p2139_p5 = pneg %p2138_p4 }
 0x6c5   : > { %p2144_p10 = pnand %p2143_p8, %p2139_p5 }
 0x6c7   : > { %2147 = shalt.err (!%p2144_p10)
}
 0x6c8   : > { %2006 = dma.vmem_to_hbm [thread:$0]  (%p2341_p3), %s1601_s18, 128, %s1603_s29, %s1588_s14  }
 0x6c9 PF: > { %s2712_s23 = sld [smem:[#allocation13_spill]] }
 0x6ca   : > { %s2713_s19 = sld [smem:[#allocation6_spill]] }
 0x6cf   : > { %p2012_p11 = scmp.ge.s32.totalorder %s2712_s23, 2 }
 0x6d0   : > { %s1614_s26 = sand.u32 1, %s2713_s19  }
 0x6d1   : > { %p2009_p12 = pnand %p2012_p11, %p2351_p9  ;;  %s1615_s21 = scalar_lea.sflag [#allocation4], %s1614_s26 }
 0x6d3   : > { %p2010_p13 = pneg %p2009_p12 }
 0x6d5   : > { %2181 = dma.done.wait (%p2010_p13), %s1615_s21, 128  }
 0x6d6   : > { %2183 = vsyncadd (%p2010_p13), %s1615_s21, 4294967168  ;;  %s27_s20 = sadd.s32 1, %s2712_s23   ;;  %s2715_s29 = sld [smem:[#allocation7_spill]] }
 0x6d7   : > { %p24_p0 = scmp.ge.s32.totalorder %s27_s20, 6   ;;  %s2716_s30 = sld [smem:[#allocation8_spill]] }
 0x6d8   : > { %s2717_s15 = sld [smem:[#allocation18_spill]] }
 0x6d9   : > { %s2718_s16 = sld [smem:[#allocation11_spill]]  ;;  %26 = sbr.rel (!%p24_p0) target bundleno = 14 (0xe), region = 158 }
 0x6da   : > { %s2719_s17 = sld [smem:[#allocation12_spill]] }
 0x6db   : > { %s2720_s18 = sld [smem:[#allocation14_spill]] }
 0x6dc   : > { %s2721_s19 = sld [smem:[#allocation16_spill]] }
 0x6de   :  { %1621 = vsyncpa [#allocation4], 1 }
 0x6df   :  { %1623 = vsyncpa [#allocation4 + $0x1], 1 }

</bundles_post_ra>
